<compile_context>
chip_gen: v5e
topology: v5e:2x2
jax: 0.10.0
libtpu: 0.0.40
codegen_flags: <defaults>
</compile_context>

<pallas_src>
import jax
import jax.numpy as jnp
from jax.experimental import pallas as pl
from jax.experimental.pallas import tpu as pltpu


def _round_up(a: int, b: int) -> int:
    return (a + b - 1) // b * b


def _mlp_classifier_kernel(x_ref, y_ref, wx_ref, wy_ref, b_ref, o_ref):
    # Two K=n_in contractions accumulated in f32: same MXU work as one K=2*n_in dot,
    # no concat temp, no in-kernel weight slicing (weights arrive pre-split).
    s = jnp.dot(x_ref[...], wx_ref[...], preferred_element_type=jnp.float32)
    s = s + jnp.dot(y_ref[...], wy_ref[...], preferred_element_type=jnp.float32)
    # Bias row [1, 128] (f32) broadcasts over the batch tile; add in f32, then cast.
    o_ref[...] = (s + b_ref[...]).astype(o_ref.dtype)


def pack_mlp_params(weight, bias, param_dtype=jnp.float32):
    """Pre-pack the nn.Linear params ONCE, outside the per-forward hot path.

    weight: [n_out, 2*n_in] (torch layout), bias: [n_out]
      -> wx: [n_in, N_PAD], wy: [n_in, N_PAD]  (param_dtype; bf16 recommended)
         bp: [1, N_PAD]                         (f32; bias add stays f32)
    N_PAD = round_up(n_out, 128): minimal lane-dense width (do NOT widen further).
    """
    n_out, two_n_in = weight.shape
    n_in = two_n_in // 2
    assert two_n_in == 2 * n_in
    n_pad = _round_up(n_out, 128)
    wt = jnp.transpose(weight).astype(jnp.float32)            # [2*n_in, n_out]
    wx = jnp.zeros((n_in, n_pad), jnp.float32).at[:, :n_out].set(wt[:n_in])
    wy = jnp.zeros((n_in, n_pad), jnp.float32).at[:, :n_out].set(wt[n_in:])
    bp = jnp.zeros((1, n_pad), jnp.float32).at[:, :n_out].set(bias.astype(jnp.float32))
    return wx.astype(param_dtype), wy.astype(param_dtype), bp


def consist_classifier_forward(x, y, wx, wy, bp, n_out, *, tb_max=1024,
                               unpad_output=True, out_dtype=jnp.float32):
    """ConsistClassifier forward (MLPClassifier branch).

    x (sent_a_n), y (sent_a_hat_nb): [B, n_in] (f32 or bf16; must match wx/wy dtype).
    wx, wy, bp: packed params from pack_mlp_params.
    Returns [B, n_out] (or the lane-dense [B, 128] slab if unpad_output=False, so the
    downstream consumer can slice/argmax lazily without an extra un-pad pass).
    """
    B, n_in = x.shape
    assert y.shape == (B, n_in)
    n_pad = bp.shape[1]
    assert wx.shape == (n_in, n_pad) and wy.shape == (n_in, n_pad)
    assert n_pad % 128 == 0 and 0 < n_out <= n_pad
    assert x.dtype == y.dtype == wx.dtype == wy.dtype, \
        "activations and packed weights must share a dtype (bf16 recommended)"
    assert tb_max > 0 and tb_max % 8 == 0, "tb_max must be a positive multiple of 8"

    # Tile selection: no wrapper-side jnp.pad; for large B force an even number of
    # >=2 grid steps so v7x's two TensorCores (each with its own HBM path) both run.
    n_tiles = pl.cdiv(B, tb_max)
    if B >= 512:
        n_tiles = max(n_tiles, 2)
    if n_tiles > 1 and n_tiles % 2:
        n_tiles += 1
    tb = min(tb_max, _round_up(pl.cdiv(B, n_tiles), 8))
    assert tb % 8 == 0
    grid = pl.cdiv(B, tb)   # ragged last tile handled by Pallas boundary blocks

    itemsize = x.dtype.itemsize
    bytes_accessed = ((x.size + y.size + wx.size + wy.size) * itemsize
                      + bp.size * bp.dtype.itemsize
                      + B * n_pad * jnp.dtype(out_dtype).itemsize)

    out = pl.pallas_call(
        _mlp_classifier_kernel,
        out_shape=jax.ShapeDtypeStruct((B, n_pad), out_dtype),
        grid=(grid,),
        in_specs=[
            pl.BlockSpec((tb, n_in), lambda i: (i, 0)),      # x batch tile
            pl.BlockSpec((tb, n_in), lambda i: (i, 0)),      # y batch tile
            pl.BlockSpec((n_in, n_pad), lambda i: (0, 0)),   # Wx  (VMEM-resident)
            pl.BlockSpec((n_in, n_pad), lambda i: (0, 0)),   # Wy  (VMEM-resident)
            pl.BlockSpec((1, n_pad), lambda i: (0, 0)),      # bias row (VMEM-resident)
        ],
        out_specs=pl.BlockSpec((tb, n_pad), lambda i: (i, 0)),
        compiler_params=pltpu.CompilerParams(
            dimension_semantics=("parallel",),               # shard batch tiles over TCs
        ),
        cost_estimate=pl.CostEstimate(
            flops=2 * B * (2 * n_in) * n_pad,
            transcendentals=0,
            bytes_accessed=int(bytes_accessed),
        ),
    )(x, y, wx, wy, bp)

    if not unpad_output:
        return out            # lane-dense [B, 128] slab; consumer slices lazily
    return out[:, :n_out]


def _reference_forward(x, y, weight, bias):
    # Pure-JAX reference of the PyTorch MLPClassifier branch (f32).
    return (jnp.concatenate([x, y], axis=-1).astype(jnp.float32)
            @ weight.T.astype(jnp.float32) + bias.astype(jnp.float32))


if __name__ == "__main__":
    key = jax.random.PRNGKey(0)

    def make_case(k, B, n_in, n_out):
        kx, ky, kw, kb = jax.random.split(k, 4)
        xx = jax.random.normal(kx, (B, n_in), dtype=jnp.float32)
        yy = jax.random.normal(ky, (B, n_in), dtype=jnp.float32)
        bound = 1.0 / ((2 * n_in) ** 0.5)  # nn.Linear default init range
        ww = jax.random.uniform(kw, (n_out, 2 * n_in), jnp.float32, -bound, bound)
        bb = jax.random.uniform(kb, (n_out,), jnp.float32, -bound, bound)
        return xx, yy, ww, bb

    fwd = jax.jit(consist_classifier_forward,
                  static_argnames=("n_out", "tb_max", "unpad_output", "out_dtype"))

    # Case 1: flow_size=128, f32 activations/weights -> exact check vs. reference.
    k1, k2 = jax.random.split(key)
    x, y, w, b = make_case(k1, B=20, n_in=128, n_out=2)
    wx, wy, bp = pack_mlp_params(w, b, param_dtype=jnp.float32)   # packed once
    out = jax.block_until_ready(fwd(x, y, wx, wy, bp, n_out=2))
    ref = _reference_forward(x, y, w, b)
    assert out.shape == (20, 2), out.shape
    assert jnp.allclose(out, ref, atol=1e-5, rtol=1e-5), \
        float(jnp.max(jnp.abs(out - ref)))

    # Same case with a tiny tile to exercise the multi-step grid + ragged last tile.
    out_tiled = jax.block_until_ready(fwd(x, y, wx, wy, bp, n_out=2, tb_max=8))
    assert jnp.allclose(out_tiled, ref, atol=1e-5, rtol=1e-5)

    # Lane-dense slab output path (no trailing un-pad slice).
    slab = jax.block_until_ready(fwd(x, y, wx, wy, bp, n_out=2, unpad_output=False))
    assert slab.shape == (20, 128)
    assert jnp.allclose(slab[:, :2], ref, atol=1e-5, rtol=1e-5)

    # Case 2: small flow_size=32 (hidden=32), bf16 activations/weights, f32 accumulate.
    x2, y2, w2, b2 = make_case(k2, B=8, n_in=32, n_out=2)
    xb, yb = x2.astype(jnp.bfloat16), y2.astype(jnp.bfloat16)
    wx2, wy2, bp2 = pack_mlp_params(w2, b2, param_dtype=jnp.bfloat16)
    out2 = jax.block_until_ready(fwd(xb, yb, wx2, wy2, bp2, n_out=2))
    # Reference on the same bf16-rounded values (isolates MXU accumulation only).
    w_bf = jnp.concatenate([wx2, wy2], axis=0).astype(jnp.float32)[:, :2]   # [2*n_in, 2]
    ref2 = (jnp.concatenate([xb, yb], axis=-1).astype(jnp.float32) @ w_bf
            + b2.astype(jnp.float32))
    assert out2.shape == (8, 2), out2.shape
    assert jnp.allclose(out2, ref2, atol=5e-3, rtol=5e-3), \
        float(jnp.max(jnp.abs(out2 - ref2)))

    print("KERNEL_OK")
</pallas_src>

<mosaic_0001>
module attributes {stable_mosaic.version = 11 : i64} {
  func.func @_mlp_classifier_kernel(%arg0: i32, %arg1: memref<24x128xf32, #tpu.memory_space<vmem>>, %arg2: memref<24x128xf32, #tpu.memory_space<vmem>>, %arg3: memref<128x128xf32, #tpu.memory_space<vmem>>, %arg4: memref<128x128xf32, #tpu.memory_space<vmem>>, %arg5: memref<1x128xf32, #tpu.memory_space<vmem>>, %arg6: memref<24x128xf32, #tpu.memory_space<vmem>>) attributes {dimension_semantics = [#tpu.dimension_semantics<parallel>], iteration_bounds = array<i64: 1>, scalar_prefetch = 0 : i64, scratch_operands = 0 : i64, tpu.core_type = #tpu.core_type<tc>, window_params = [{transform_indices = @transform_0, window_bounds = array<i64: 24, 128>}, {transform_indices = @transform_1, window_bounds = array<i64: 24, 128>}, {pipeline_mode = #tpu.pipeline_mode<synchronous>, transform_indices = @transform_2, window_bounds = array<i64: 128, 128>}, {pipeline_mode = #tpu.pipeline_mode<synchronous>, transform_indices = @transform_3, window_bounds = array<i64: 128, 128>}, {pipeline_mode = #tpu.pipeline_mode<synchronous>, transform_indices = @transform_4, window_bounds = array<i64: 1, 128>}, {transform_indices = @transform_5, window_bounds = array<i64: 24, 128>}]} {
    %c0 = arith.constant 0 : index
    %c0_0 = arith.constant 0 : index
    %0 = vector.load %arg1[%c0, %c0_0] : memref<24x128xf32, #tpu.memory_space<vmem>>, vector<24x128xf32>
    %c0_1 = arith.constant 0 : index
    %c0_2 = arith.constant 0 : index
    %1 = vector.load %arg3[%c0_1, %c0_2] : memref<128x128xf32, #tpu.memory_space<vmem>>, vector<128x128xf32>
    %cst = arith.constant dense<0.000000e+00> : vector<24x128xf32>
    %2 = tpu.matmul %0, %1, %cst {dimension_numbers = #tpu.dot_dimension_numbers<[1], [0], [0], [1], [0, 0, 1, 1], [], []>} : vector<24x128xf32>, vector<128x128xf32>, vector<24x128xf32> -> vector<24x128xf32>
    %c0_3 = arith.constant 0 : index
    %c0_4 = arith.constant 0 : index
    %3 = vector.load %arg2[%c0_3, %c0_4] : memref<24x128xf32, #tpu.memory_space<vmem>>, vector<24x128xf32>
    %c0_5 = arith.constant 0 : index
    %c0_6 = arith.constant 0 : index
    %4 = vector.load %arg4[%c0_5, %c0_6] : memref<128x128xf32, #tpu.memory_space<vmem>>, vector<128x128xf32>
    %cst_7 = arith.constant dense<0.000000e+00> : vector<24x128xf32>
    %5 = tpu.matmul %3, %4, %cst_7 {dimension_numbers = #tpu.dot_dimension_numbers<[1], [0], [0], [1], [0, 0, 1, 1], [], []>} : vector<24x128xf32>, vector<128x128xf32>, vector<24x128xf32> -> vector<24x128xf32>
    %6 = arith.addf %2, %5 : vector<24x128xf32>
    %c0_8 = arith.constant 0 : index
    %c0_9 = arith.constant 0 : index
    %7 = vector.load %arg5[%c0_8, %c0_9] : memref<1x128xf32, #tpu.memory_space<vmem>>, vector<1x128xf32>
    %8 = vector.broadcast %7 : vector<1x128xf32> to vector<24x128xf32>
    %9 = arith.addf %6, %8 : vector<24x128xf32>
    %c0_10 = arith.constant 0 : index
    %c0_11 = arith.constant 0 : index
    %10 = vector.load %arg6[%c0_10, %c0_11] : memref<24x128xf32, #tpu.memory_space<vmem>>, vector<24x128xf32>
    tpu.vector_store %arg6[%c0_10, %c0_11], %9 {strides = array<i32>} : memref<24x128xf32, #tpu.memory_space<vmem>>, vector<24x128xf32>,
    return
  }
  func.func @transform_0(%arg0: i32) -> (i32, i32) {
    %c0_i32 = arith.constant 0 : i32
    %c0_i32_0 = arith.constant 0 : i32
    return %arg0, %c0_i32 : i32, i32
  }
  func.func @transform_1(%arg0: i32) -> (i32, i32) {
    %c0_i32 = arith.constant 0 : i32
    %c0_i32_0 = arith.constant 0 : i32
    return %arg0, %c0_i32 : i32, i32
  }
  func.func @transform_2(%arg0: i32) -> (i32, i32) {
    %c0_i32 = arith.constant 0 : i32
    %c0_i32_0 = arith.constant 0 : i32
    %c0_i32_1 = arith.constant 0 : i32
    return %c0_i32, %c0_i32_0 : i32, i32
  }
  func.func @transform_3(%arg0: i32) -> (i32, i32) {
    %c0_i32 = arith.constant 0 : i32
    %c0_i32_0 = arith.constant 0 : i32
    %c0_i32_1 = arith.constant 0 : i32
    return %c0_i32, %c0_i32_0 : i32, i32
  }
  func.func @transform_4(%arg0: i32) -> (i32, i32) {
    %c0_i32 = arith.constant 0 : i32
    %c0_i32_0 = arith.constant 0 : i32
    %c0_i32_1 = arith.constant 0 : i32
    return %c0_i32, %c0_i32_0 : i32, i32
  }
  func.func @transform_5(%arg0: i32) -> (i32, i32) {
    %c0_i32 = arith.constant 0 : i32
    %c0_i32_0 = arith.constant 0 : i32
    return %arg0, %c0_i32 : i32, i32
  }
}

</mosaic_0001>

<bundles_post_ra>
// kernel: consist_classifier_forward.1
= control target key start
LH: loop header
LB: loop body
LE: loop exit
PB: predicated region body
PF: predicated region fallthrough
CT: control target
= control target key end

     0   :  { %10 = vsyncpa [#allocation3], 0  ;;  %s391_s0 = inlined_call_operand.hbm [shape: f32[20,128], index: 0, kind: input, shape index: {}]   ;;  %s392_s1 = inlined_call_operand.hbm [shape: f32[20,128], index: 1, kind: input, shape index: {}]   ;;  %s393_s2 = inlined_call_operand.hbm [shape: f32[128,128], index: 2, kind: input, shape index: {}]   ;;  %s394_s3 = inlined_call_operand.hbm [shape: f32[128,128], index: 3, kind: input, shape index: {}]   ;;  %s395_s4 = inlined_call_operand.vmem [shape: f32[1,128], index: 4, kind: input, shape index: {}]   ;;  %s396_s5 = inlined_call_operand.vmem [shape: f32[20,128], index: 5, kind: output, shape index: {}]  }
   0x1   :  { %11 = vsyncpa [#allocation5], 0 }
   0x2   :  { %12 = vsyncpa [#allocation8], 0  ;;  %s30_s20 = sshll.u32 %s392_s1, 4  ;;  %s331_s21 = smov [#allocation4]   ;;  %s31_s20 = int_to_ptr.hbm [resolvable:$true] %s30_s20 }
   0x3   :  { %s32_s22 = sshll.u32 %s331_s21, 4  ;;  %s17_s25 = sshll.u32 %s391_s0, 4  ;;  %s33_s22 = int_to_ptr.vmem [resolvable:$true] %s32_s22  ;;  %s18_s25 = int_to_ptr.hbm [resolvable:$true] %s17_s25 }
   0x4   :  { %s332_s26 = smov 128   ;;  %s333_s27 = smov 8  }
   0x5   :  { %38 = dma.hbm_to_vmem [thread:$0]  %s31_s20, 384, %s33_s22, [#allocation5], %s332_s26, %s332_s26, %s333_s27  }
   0x6   :  { %s334_s28 = smov [#allocation2]   ;;  %s43_s7 = sshll.u32 %s393_s2, 4  ;;  %s44_s7 = int_to_ptr.hbm [resolvable:$true] %s43_s7 }
   0x7   :  { %s19_s29 = sshll.u32 %s334_s28, 4  ;;  %s56_s9 = sshll.u32 %s394_s3, 4  ;;  %s20_s29 = int_to_ptr.vmem [resolvable:$true] %s19_s29  ;;  %s57_s9 = int_to_ptr.hbm [resolvable:$true] %s56_s9 }
   0x8   :  { %25 = dma.hbm_to_vmem [thread:$0]  %s18_s25, 384, %s20_s29, [#allocation3], %s332_s26, %s332_s26, %s333_s27  }
   0x9   :  { %s335_s10 = smov [#allocation6]   ;;  %s336_s0 = smov [#allocation7]  }
   0xa   :  { %s45_s11 = sshll.u32 %s335_s10, 4  ;;  %s58_s12 = sshll.u32 %s336_s0, 4  ;;  %s46_s11 = int_to_ptr.vmem [resolvable:$true] %s45_s11  ;;  %s59_s12 = int_to_ptr.vmem [resolvable:$true] %s58_s12 }
   0xb   :  { %51 = dma.hbm_to_vmem [thread:$0]  %s44_s7, 2048, %s46_s11, [#allocation5], %s332_s26, %s332_s26, %s333_s27  }
   0xc   :  { %64 = dma.hbm_to_vmem [thread:$0]  %s57_s9, 2048, %s59_s12, [#allocation8], %s332_s26, %s332_s26, %s333_s27  }
   0xd   :  { %325 = dma.done.wait [#allocation3], 384  }
   0xe   :  { %326 = vsyncadd [#allocation3], 4294966912 }
   0xf   :  { %327 = dma.done.wait [#allocation5], 2432  }
  0x10   :  { %328 = vsyncadd [#allocation5], 4294964864 }
  0x11   :  { %329 = dma.done.wait [#allocation8], 2048  }
  0x12   :  { %330 = vsyncadd [#allocation8], 4294965248  ;;  %v120_v0 = vld [vmem:[#allocation7 + $0x78] sm:$0xff]  ;;  %v119_v2 = vld [vmem:[#allocation7 + $0x70] sm:$0xff] }
  0x13   :  { %v101_v1 = vld [vmem:[#allocation6 + $0x78] sm:$0xff]  ;;  %190 = vmatpush.msra.mxu2 %v120_v0  ;;  %v100_v3 = vld [vmem:[#allocation6 + $0x70] sm:$0xff]  ;;  %v118_v4 = vld [vmem:[#allocation7 + $0x68] sm:$0xff]  ;;  %121 = vmatpush.msra.mxu0 %v120_v0 }
  0x14   :  { %206 = vmatpush.msra.mxu3 %v101_v1  ;;  %v99_v5 = vld [vmem:[#allocation6 + $0x68] sm:$0xff]  ;;  %147 = vmatpush.msra.mxu1 %v101_v1  ;;  %v117_v6 = vld [vmem:[#allocation7 + $0x60] sm:$0xff]  ;;  %v116_v8 = vld [vmem:[#allocation7 + $0x58] sm:$0xff] }
  0x15   :  { %191 = vmatpush.msra.mxu2 %v119_v2  ;;  %v98_v7 = vld [vmem:[#allocation6 + $0x60] sm:$0xff]  ;;  %122 = vmatpush.msra.mxu0 %v119_v2  ;;  %v97_v9 = vld [vmem:[#allocation6 + $0x58] sm:$0xff]  ;;  %v115_v10 = vld [vmem:[#allocation7 + $0x50] sm:$0xff] }
  0x16   :  { %207 = vmatpush.msra.mxu3 %v100_v3  ;;  %148 = vmatpush.msra.mxu1 %v100_v3  ;;  %v96_v11 = vld [vmem:[#allocation6 + $0x50] sm:$0xff]  ;;  %v114_v12 = vld [vmem:[#allocation7 + $0x48] sm:$0xff]  ;;  %v113_v14 = vld [vmem:[#allocation7 + $0x40] sm:$0xff] }
  0x17   :  { %192 = vmatpush.msra.mxu2 %v118_v4  ;;  %123 = vmatpush.msra.mxu0 %v118_v4  ;;  %v95_v13 = vld [vmem:[#allocation6 + $0x48] sm:$0xff]  ;;  %v94_v15 = vld [vmem:[#allocation6 + $0x40] sm:$0xff]  ;;  %v112_v16 = vld [vmem:[#allocation7 + $0x38] sm:$0xff] }
  0x18   :  { %208 = vmatpush.msra.mxu3 %v99_v5  ;;  %149 = vmatpush.msra.mxu1 %v99_v5  ;;  %v93_v17 = vld [vmem:[#allocation6 + $0x38] sm:$0xff]  ;;  %v111_v18 = vld [vmem:[#allocation7 + $0x30] sm:$0xff]  ;;  %v110_v20 = vld [vmem:[#allocation7 + $0x28] sm:$0xff] }
  0x19   :  { %193 = vmatpush.msra.mxu2 %v117_v6  ;;  %124 = vmatpush.msra.mxu0 %v117_v6  ;;  %v92_v19 = vld [vmem:[#allocation6 + $0x30] sm:$0xff]  ;;  %v91_v21 = vld [vmem:[#allocation6 + $0x28] sm:$0xff]  ;;  %v109_v22 = vld [vmem:[#allocation7 + $0x20] sm:$0xff] }
  0x1a   :  { %209 = vmatpush.msra.mxu3 %v98_v7  ;;  %150 = vmatpush.msra.mxu1 %v98_v7  ;;  %v90_v23 = vld [vmem:[#allocation6 + $0x20] sm:$0xff]  ;;  %v108_v24 = vld [vmem:[#allocation7 + $0x18] sm:$0xff]  ;;  %v107_v26 = vld [vmem:[#allocation7 + $0x10] sm:$0xff] }
  0x1b   :  { %194 = vmatpush.msra.mxu2 %v116_v8  ;;  %125 = vmatpush.msra.mxu0 %v116_v8  ;;  %v89_v25 = vld [vmem:[#allocation6 + $0x18] sm:$0xff]  ;;  %v88_v27 = vld [vmem:[#allocation6 + $0x10] sm:$0xff]  ;;  %v106_v28 = vld [vmem:[#allocation7 + $0x8] sm:$0xff] }
  0x1c   :  { %210 = vmatpush.msra.mxu3 %v97_v9  ;;  %151 = vmatpush.msra.mxu1 %v97_v9  ;;  %v87_v29 = vld [vmem:[#allocation6 + $0x8] sm:$0xff]  ;;  %v105_v30 = vld [vmem:[#allocation7] sm:$0xff]  ;;  %v103_v32 = vld [vmem:[#allocation4 + $0x8] sm:$0xff] }
  0x1d   :  { %195 = vmatpush.msra.mxu2 %v115_v10  ;;  %126 = vmatpush.msra.mxu0 %v115_v10  ;;  %v86_v31 = vld [vmem:[#allocation6] sm:$0xff]  ;;  %v84_v33 = vld [vmem:[#allocation2 + $0x8] sm:$0xff]  ;;  %v102_v34 = vld [vmem:[#allocation4] sm:$0xff] }
  0x1e   :  { %211 = vmatpush.msra.mxu3 %v96_v11  ;;  %152 = vmatpush.msra.mxu1 %v96_v11  ;;  %v83_v35 = vld [vmem:[#allocation2] sm:$0xff]  ;;  %v104_v36 = vld [vmem:[#allocation4 + $0x10] sm:$0xff]  ;;  %v85_v37 = vld [vmem:[#allocation2 + $0x10] sm:$0xff] }
  0x1f   :  { %196 = vmatpush.msra.mxu2 %v114_v12  ;;  %127 = vmatpush.msra.mxu0 %v114_v12  ;;  %v228_v40 = vld [vmem:[%s395_s4] ss:$0 sm:$0xff] }
  0x20   :  { %212 = vmatpush.msra.mxu3 %v95_v13  ;;  %153 = vmatpush.msra.mxu1 %v95_v13 }
  0x21   :  { %197 = vmatpush.msra.mxu2 %v113_v14  ;;  %128 = vmatpush.msra.mxu0 %v113_v14 }
  0x22   :  { %213 = vmatpush.msra.mxu3 %v94_v15  ;;  %154 = vmatpush.msra.mxu1 %v94_v15 }
  0x23   :  { %198 = vmatpush.msra.mxu2 %v112_v16  ;;  %129 = vmatpush.msra.mxu0 %v112_v16 }
  0x24   :  { %214 = vmatpush.msra.mxu3 %v93_v17  ;;  %155 = vmatpush.msra.mxu1 %v93_v17 }
  0x25   :  { %199 = vmatpush.msra.mxu2 %v111_v18  ;;  %130 = vmatpush.msra.mxu0 %v111_v18 }
  0x26   :  { %215 = vmatpush.msra.mxu3 %v92_v19  ;;  %156 = vmatpush.msra.mxu1 %v92_v19 }
  0x27   :  { %200 = vmatpush.msra.mxu2 %v110_v20  ;;  %131 = vmatpush.msra.mxu0 %v110_v20 }
  0x28   :  { %216 = vmatpush.msra.mxu3 %v91_v21  ;;  %157 = vmatpush.msra.mxu1 %v91_v21 }
  0x29   :  { %201 = vmatpush.msra.mxu2 %v109_v22  ;;  %132 = vmatpush.msra.mxu0 %v109_v22 }
  0x2a   :  { %217 = vmatpush.msra.mxu3 %v90_v23  ;;  %158 = vmatpush.msra.mxu1 %v90_v23 }
  0x2b   :  { %202 = vmatpush.msra.mxu2 %v108_v24  ;;  %133 = vmatpush.msra.mxu0 %v108_v24 }
  0x2c   :  { %218 = vmatpush.msra.mxu3 %v89_v25  ;;  %159 = vmatpush.msra.mxu1 %v89_v25 }
  0x2d   :  { %203 = vmatpush.msra.mxu2 %v107_v26  ;;  %134 = vmatpush.msra.mxu0 %v107_v26 }
  0x2e   :  { %219 = vmatpush.msra.mxu3 %v88_v27  ;;  %160 = vmatpush.msra.mxu1 %v88_v27 }
  0x2f   :  { %204 = vmatpush.msra.mxu2 %v106_v28  ;;  %135 = vmatpush.msra.mxu0 %v106_v28 }
  0x30   :  { %220 = vmatpush.msra.mxu3 %v87_v29  ;;  %161 = vmatpush.msra.mxu1 %v87_v29 }
  0x31   :  { %205 = vmatpush.msra.mxu2 %v105_v30  ;;  %136 = vmatpush.msra.mxu0 %v105_v30 }
  0x32   :  { %221 = vmatpush.msra.mxu3 %v86_v31  ;;  %140 = vmatmul.f32.vlgmr.msra.gmra.mxu2 %v103_v32 }
  0x33   :  { %166 = vmatmul.f32.vlgmr.msra.gmra.mxu3 %v84_v33  ;;  %162 = vmatpush.msra.mxu1 %v86_v31 }
  0x34   :  { %137 = vmatmul.f32.vlgmr.msra.gmra.mxu0 %v102_v34  ;;  %163 = vmatmul.f32.vlgmr.msra.gmra.mxu1 %v83_v35 }
  0x3a   :  { %143 = vmatmul.f32.gmra.mxu2 %v104_v36 }
  0x3b   :  { %169 = vmatmul.f32.gmra.mxu3 %v85_v37 }
  0xb1   :  { %v138_v38 = vpop.f32.mrf.mxu0  ;;  %v164_v39 = vpop.f32.mrf.mxu1 }
  0xb2   :  { %v165_v41 = vadd.f32 %v164_v39, %v138_v38 }
  0xb4   :  { %v177_v42 = vadd.f32 %v228_v40, %v165_v41 }
  0xb5   :  { %v141_v43 = vpop.f32.mrf.mxu2 }
  0xb6   :  { %v167_v44 = vpop.f32.mrf.mxu3  ;;  %180 = vst [vmem:[%s396_s5] sm:$0xff] %v177_v42 }
  0xb7   :  { %v168_v45 = vadd.f32 %v167_v44, %v141_v43 }
  0xb9   :  { %v178_v46 = vadd.f32 %v228_v40, %v168_v45 }
  0xbb   :  { %181 = vst [vmem:[%s396_s5 + $0x8] sm:$0xff] %v178_v46 }
  0xbd   :  { %v144_v47 = vpop.f32.mrf.mxu2 }
  0xbe   :  { %v170_v48 = vpop.f32.mrf.mxu3 }
  0xbf   :  { %v171_v49 = vadd.f32 %v170_v48, %v144_v47 }
  0xc1   :  { %v179_v50 = vadd.f32 %v228_v40, %v171_v49 }
  0xc3   :  { %182 = vst [vmem:[%s396_s5 + $0x10] sm:$0xff] %v179_v50 }
  0xc4   :  { %187 = vsyncpa [#allocation3], 1 }
  0xc5   :  { %188 = vsyncpa [#allocation5], 1 }
  0xc6   :  { %189 = vsyncpa [#allocation8], 1 }

</bundles_post_ra>
